<compile_context>
chip_gen: v5e
topology: v5e:2x2
jax: 0.10.0
libtpu: 0.0.40
codegen_flags: <defaults>
</compile_context>

<pallas_src>
import functools

import jax
import jax.numpy as jnp
from jax.experimental import pallas as pl
from jax.experimental.pallas import tpu as pltpu


def _round_up(n, m):
    return ((n + m - 1) // m) * m


def _choose_batch_tile(B):
    """Batch tile size.

    * B < 512 : a single grid step (minimal padding, 8-row aligned).
    * B >= 512: at least two 128-aligned tiles (so the batch axis can shard
      across v7x's two TensorCores), capped at 1024 rows so double-buffered
      x/out tiles plus temporaries stay far below v5e's 16 MiB default scoped
      VMEM limit (and v7x's 64 MiB physical VMEM).
    """
    if B < 512:
        return _round_up(max(B, 8), 8)
    return min(1024, _round_up((B + 1) // 2, 128))


def _rnn_dnn_kernel(x_ref, w_gate_ref, b_gate_ref, wout_t_ref, bout_ref,
                    out_ref, *, hp):
    """Zero-state LSTM step + output Linear, all operands resident in VMEM.

    x_ref      : (TB, D)        flattened input window tile
    w_gate_ref : (D, 3*Hp)      [W_i | W_o | W_g]^T, each gate zero-padded to Hp lanes
    b_gate_ref : (1, 3*Hp)      (b_ih + b_hh) for gates (i, o, g), zero-padded
    wout_t_ref : (Hp, Opad)     DNN Linear weight^T, zero-padded
    bout_ref   : (1, Opad)      zero-padded
    out_ref    : (TB, Opad)
    """
    x = x_ref[...]

    # One MXU push for all needed gates.
    gates = (jnp.dot(x, w_gate_ref[...], preferred_element_type=jnp.float32)
             + b_gate_ref[...])                      # (TB, 3*Hp), lanes = [i | o | g]

    # Slices fall on 128-lane vreg boundaries -> free layout views.
    sig = jax.nn.sigmoid(gates[:, :2 * hp])          # contiguous sigmoid block: i, o
    g_g = jnp.tanh(gates[:, 2 * hp:])                # contiguous tanh block: g

    i_g = sig[:, :hp]
    o_g = sig[:, hp:]

    # Padded lanes: sigmoid(0)=0.5, tanh(0)=0 -> c1 = 0 -> h1 = 0 there (exact).
    c1 = i_g * g_g                                   # f*c0 == 0 for zero cell state
    h1 = o_g * jnp.tanh(c1)

    out = (jnp.dot(h1, wout_t_ref[...], preferred_element_type=jnp.float32)
           + bout_ref[...])
    out_ref[...] = out.astype(out_ref.dtype)         # lane-dense unmasked store


def rnn_dnn_forward(x, params, *, pred_size, forecast):
    """x: (B, C, W) float32 -> (B, pred_size, forecast)."""
    B, C, W = x.shape
    D = C * W
    H = params["w_hh"].shape[1]
    O = pred_size * forecast
    Hp = _round_up(H, 128)                           # per-gate lane padding
    Op = _round_up(O, 128)                           # lane-dense output padding

    x_flat = x.reshape(B, D)                         # torch.flatten(inp, start_dim=1)

    # ---- parameter prep (done once in JAX; constant-folded under jit) ----
    w_ih = params["w_ih"]                            # (4H, D), PyTorch order i,f,g,o
    b_sum = params["b_ih"] + params["b_hh"]          # fold the two biases
    # Zero initial state => h0 @ W_hh == 0 and the forget gate is unused.
    # Keep only (i, o, g), each zero-padded to Hp lanes so nonlinearity slices
    # are 128-aligned inside the kernel.
    w_gate = jnp.zeros((D, 3 * Hp), jnp.float32)
    w_gate = w_gate.at[:, 0 * Hp:0 * Hp + H].set(w_ih[0 * H:1 * H].T)   # i
    w_gate = w_gate.at[:, 1 * Hp:1 * Hp + H].set(w_ih[3 * H:4 * H].T)   # o
    w_gate = w_gate.at[:, 2 * Hp:2 * Hp + H].set(w_ih[2 * H:3 * H].T)   # g

    b_gate = jnp.zeros((1, 3 * Hp), jnp.float32)
    b_gate = b_gate.at[0, 0 * Hp:0 * Hp + H].set(b_sum[0 * H:1 * H])
    b_gate = b_gate.at[0, 1 * Hp:1 * Hp + H].set(b_sum[3 * H:4 * H])
    b_gate = b_gate.at[0, 2 * Hp:2 * Hp + H].set(b_sum[2 * H:3 * H])

    wout_t = jnp.zeros((Hp, Op), jnp.float32).at[:H, :O].set(params["w_out"].T)
    bout = jnp.zeros((1, Op), jnp.float32).at[0, :O].set(params["b_out"])

    # ---- batch tiling: zero-pad batch to a multiple of the tile ----
    tb = _choose_batch_tile(B)
    B_pad = _round_up(B, tb)
    if B_pad != B:
        x_flat = jnp.concatenate(
            [x_flat, jnp.zeros((B_pad - B, D), x_flat.dtype)], axis=0)
    grid = (B_pad // tb,)

    out = pl.pallas_call(
        functools.partial(_rnn_dnn_kernel, hp=Hp),
        out_shape=jax.ShapeDtypeStruct((B_pad, Op), jnp.float32),
        grid=grid,
        in_specs=[
            pl.BlockSpec((tb, D), lambda i: (i, 0)),              # x: pipelined over batch
            pl.BlockSpec(memory_space=pltpu.MemorySpace.VMEM),    # w_gate: resident, 1-buffered
            pl.BlockSpec(memory_space=pltpu.MemorySpace.VMEM),    # b_gate
            pl.BlockSpec(memory_space=pltpu.MemorySpace.VMEM),    # wout_t
            pl.BlockSpec(memory_space=pltpu.MemorySpace.VMEM),    # bout
        ],
        out_specs=pl.BlockSpec((tb, Op), lambda i: (i, 0)),       # lane-dense output tile
        compiler_params=pltpu.CompilerParams(
            dimension_semantics=("parallel",)),                   # megacore-shard batch tiles
    )(x_flat, w_gate, b_gate, wout_t, bout)

    # Drop batch/lane padding, reshape (Pred_Type == 'Point').
    return out[:B, :O].reshape(B, pred_size, forecast)


def init_params(key, input_channels, window_size, blocks, pred_size, forecast):
    """Deterministic synthetic parameters (PyTorch-style uniform(-1/sqrt(H), 1/sqrt(H)))."""
    D = input_channels * window_size
    H = blocks
    O = pred_size * forecast
    k = jax.random.split(key, 6)
    s = 1.0 / jnp.sqrt(H)
    return {
        "w_ih": jax.random.uniform(k[0], (4 * H, D), jnp.float32, -s, s),
        "w_hh": jax.random.uniform(k[1], (4 * H, H), jnp.float32, -s, s),
        "b_ih": jax.random.uniform(k[2], (4 * H,), jnp.float32, -s, s),
        "b_hh": jax.random.uniform(k[3], (4 * H,), jnp.float32, -s, s),
        "w_out": jax.random.uniform(k[4], (O, H), jnp.float32, -s, s),
        "b_out": jax.random.uniform(k[5], (O,), jnp.float32, -s, s),
    }


def _reference(x, params, pred_size, forecast):
    """Pure-JAX reference with full PyTorch LSTM-step semantics (zero h0/c0)."""
    B = x.shape[0]
    H = params["w_hh"].shape[1]
    xf = x.reshape(B, -1)
    h0 = jnp.zeros((B, H), jnp.float32)
    c0 = jnp.zeros((B, H), jnp.float32)
    gates = xf @ params["w_ih"].T + params["b_ih"] + h0 @ params["w_hh"].T + params["b_hh"]
    i, f, g, o = (gates[:, 0:H], gates[:, H:2 * H], gates[:, 2 * H:3 * H], gates[:, 3 * H:4 * H])
    i, f, o = jax.nn.sigmoid(i), jax.nn.sigmoid(f), jax.nn.sigmoid(o)
    g = jnp.tanh(g)
    c1 = f * c0 + i * g
    h1 = o * jnp.tanh(c1)
    out = h1 @ params["w_out"].T + params["b_out"]
    return out.reshape(B, pred_size, forecast)


if __name__ == "__main__":
    # m = RNN_DNN(input_channels=2, pred_size=1, window_size=10, blocks=32, num_layers=1)
    input_channels = 2
    pred_size = 1
    window_size = 10
    blocks = 32
    forecast = 1
    batch = 32

    key = jax.random.PRNGKey(0)
    kx, kp = jax.random.split(key)
    x = jax.random.normal(kx, (batch, input_channels, window_size), jnp.float32)
    params = init_params(kp, input_channels, window_size, blocks, pred_size, forecast)

    out = rnn_dnn_forward(x, params, pred_size=pred_size, forecast=forecast)
    out = jax.block_until_ready(out)

    ref = _reference(x, params, pred_size, forecast)
    assert out.shape == (batch, pred_size, forecast), out.shape
    assert jnp.allclose(out, ref, atol=1e-5, rtol=1e-5), "mismatch vs reference"

    print("KERNEL_OK")
</pallas_src>

<mosaic_0001>
module attributes {stable_mosaic.version = 11 : i64} {
  func.func @_rnn_dnn_kernel(%arg0: i32, %arg1: memref<32x20xf32, #tpu.memory_space<vmem>>, %arg2: memref<20x384xf32, #tpu.memory_space<vmem>>, %arg3: memref<1x384xf32, #tpu.memory_space<vmem>>, %arg4: memref<128x128xf32, #tpu.memory_space<vmem>>, %arg5: memref<1x128xf32, #tpu.memory_space<vmem>>, %arg6: memref<32x128xf32, #tpu.memory_space<vmem>>) attributes {dimension_semantics = [#tpu.dimension_semantics<parallel>], iteration_bounds = array<i64: 1>, scalar_prefetch = 0 : i64, scratch_operands = 0 : i64, tpu.core_type = #tpu.core_type<tc>, window_params = [{transform_indices = @transform_0, window_bounds = array<i64: 32, 20>}, {pipeline_mode = #tpu.pipeline_mode<synchronous>, transform_indices = @transform_1, window_bounds = array<i64: 20, 384>}, {pipeline_mode = #tpu.pipeline_mode<synchronous>, transform_indices = @transform_2, window_bounds = array<i64: 1, 384>}, {pipeline_mode = #tpu.pipeline_mode<synchronous>, transform_indices = @transform_3, window_bounds = array<i64: 128, 128>}, {pipeline_mode = #tpu.pipeline_mode<synchronous>, transform_indices = @transform_4, window_bounds = array<i64: 1, 128>}, {transform_indices = @transform_5, window_bounds = array<i64: 32, 128>}]} {
    %c0 = arith.constant 0 : index
    %c0_0 = arith.constant 0 : index
    %0 = vector.load %arg1[%c0, %c0_0] : memref<32x20xf32, #tpu.memory_space<vmem>>, vector<32x20xf32>
    %c0_1 = arith.constant 0 : index
    %c0_2 = arith.constant 0 : index
    %1 = vector.load %arg2[%c0_1, %c0_2] : memref<20x384xf32, #tpu.memory_space<vmem>>, vector<20x384xf32>
    %cst = arith.constant dense<0.000000e+00> : vector<32x384xf32>
    %2 = tpu.matmul %0, %1, %cst {dimension_numbers = #tpu.dot_dimension_numbers<[1], [0], [0], [1], [0, 0, 1, 1], [], []>} : vector<32x20xf32>, vector<20x384xf32>, vector<32x384xf32> -> vector<32x384xf32>
    %c0_3 = arith.constant 0 : index
    %c0_4 = arith.constant 0 : index
    %3 = vector.load %arg3[%c0_3, %c0_4] : memref<1x384xf32, #tpu.memory_space<vmem>>, vector<1x384xf32>
    %4 = vector.broadcast %3 : vector<1x384xf32> to vector<32x384xf32>
    %5 = arith.addf %2, %4 : vector<32x384xf32>
    %6 = vector.extract_strided_slice %5 {offsets = [0, 0], sizes = [32, 256], strides = [1, 1]} : vector<32x384xf32> to vector<32x256xf32>
    %7 = arith.negf %6 : vector<32x256xf32>
    %8 = math.exp %7 : vector<32x256xf32>
    %cst_5 = arith.constant 1.000000e+00 : f32
    %9 = vector.broadcast %cst_5 : f32 to vector<32x256xf32>
    %10 = arith.addf %9, %8 : vector<32x256xf32>
    %11 = arith.divf %9, %10 : vector<32x256xf32>
    %12 = vector.extract_strided_slice %5 {offsets = [0, 256], sizes = [32, 128], strides = [1, 1]} : vector<32x384xf32> to vector<32x128xf32>
    %13 = math.tanh %12 : vector<32x128xf32>
    %14 = vector.extract_strided_slice %11 {offsets = [0, 0], sizes = [32, 128], strides = [1, 1]} : vector<32x256xf32> to vector<32x128xf32>
    %15 = vector.extract_strided_slice %11 {offsets = [0, 128], sizes = [32, 128], strides = [1, 1]} : vector<32x256xf32> to vector<32x128xf32>
    %16 = arith.mulf %14, %13 : vector<32x128xf32>
    %17 = math.tanh %16 : vector<32x128xf32>
    %18 = arith.mulf %15, %17 : vector<32x128xf32>
    %c0_6 = arith.constant 0 : index
    %c0_7 = arith.constant 0 : index
    %19 = vector.load %arg4[%c0_6, %c0_7] : memref<128x128xf32, #tpu.memory_space<vmem>>, vector<128x128xf32>
    %cst_8 = arith.constant dense<0.000000e+00> : vector<32x128xf32>
    %20 = tpu.matmul %18, %19, %cst_8 {dimension_numbers = #tpu.dot_dimension_numbers<[1], [0], [0], [1], [0, 0, 1, 1], [], []>} : vector<32x128xf32>, vector<128x128xf32>, vector<32x128xf32> -> vector<32x128xf32>
    %c0_9 = arith.constant 0 : index
    %c0_10 = arith.constant 0 : index
    %21 = vector.load %arg5[%c0_9, %c0_10] : memref<1x128xf32, #tpu.memory_space<vmem>>, vector<1x128xf32>
    %22 = vector.broadcast %21 : vector<1x128xf32> to vector<32x128xf32>
    %23 = arith.addf %20, %22 : vector<32x128xf32>
    %c0_11 = arith.constant 0 : index
    %c0_12 = arith.constant 0 : index
    %24 = vector.load %arg6[%c0_11, %c0_12] : memref<32x128xf32, #tpu.memory_space<vmem>>, vector<32x128xf32>
    tpu.vector_store %arg6[%c0_11, %c0_12], %23 {strides = array<i32>} : memref<32x128xf32, #tpu.memory_space<vmem>>, vector<32x128xf32>,
    return
  }
  func.func @transform_0(%arg0: i32) -> (i32, i32) {
    %c0_i32 = arith.constant 0 : i32
    %c0_i32_0 = arith.constant 0 : i32
    return %arg0, %c0_i32 : i32, i32
  }
  func.func @transform_1(%arg0: i32) -> (i32, i32) {
    %c0_i32 = arith.constant 0 : i32
    %c0_i32_0 = arith.constant 0 : i32
    %c0_i32_1 = arith.constant 0 : i32
    return %c0_i32, %c0_i32_0 : i32, i32
  }
  func.func @transform_2(%arg0: i32) -> (i32, i32) {
    %c0_i32 = arith.constant 0 : i32
    %c0_i32_0 = arith.constant 0 : i32
    %c0_i32_1 = arith.constant 0 : i32
    return %c0_i32, %c0_i32_0 : i32, i32
  }
  func.func @transform_3(%arg0: i32) -> (i32, i32) {
    %c0_i32 = arith.constant 0 : i32
    %c0_i32_0 = arith.constant 0 : i32
    %c0_i32_1 = arith.constant 0 : i32
    return %c0_i32, %c0_i32_0 : i32, i32
  }
  func.func @transform_4(%arg0: i32) -> (i32, i32) {
    %c0_i32 = arith.constant 0 : i32
    %c0_i32_0 = arith.constant 0 : i32
    %c0_i32_1 = arith.constant 0 : i32
    return %c0_i32, %c0_i32_0 : i32, i32
  }
  func.func @transform_5(%arg0: i32) -> (i32, i32) {
    %c0_i32 = arith.constant 0 : i32
    %c0_i32_0 = arith.constant 0 : i32
    return %arg0, %c0_i32 : i32, i32
  }
}

</mosaic_0001>

<bundles_post_ra>
// kernel: tpu_custom_call.1
= control target key start
LH: loop header
LB: loop body
LE: loop exit
PB: predicated region body
PF: predicated region fallthrough
CT: control target
= control target key end

     0   :  { %10 = vsyncpa [#allocation3], 0  ;;  %s850_s0 = inlined_call_operand.vmem [shape: f32[32,20], index: 0, kind: input, shape index: {}]   ;;  %s851_s1 = inlined_call_operand.hbm [shape: f32[20,384], index: 1, kind: input, shape index: {}]   ;;  %s852_s2 = inlined_call_operand.vmem [shape: f32[1,384], index: 2, kind: input, shape index: {}]   ;;  %s853_s3 = inlined_call_operand.hbm [shape: f32[128,128], index: 3, kind: input, shape index: {}]   ;;  %s854_s4 = inlined_call_operand.vmem [shape: f32[1,128], index: 4, kind: input, shape index: {}]   ;;  %s855_s5 = inlined_call_operand.hbm [shape: f32[32,128], index: 5, kind: output, shape index: {}]  }
   0x1   :  { %11 = vsyncpa [#allocation6], 0 }
   0x2   :  { %12 = vsyncpa [#allocation4], 0  ;;  %s19_s20 = sshll.u32 %s851_s1, 4  ;;  %s630_s21 = smov [#allocation2]   ;;  %s20_s20 = int_to_ptr.hbm [resolvable:$true] %s19_s20 }
   0x3   :  { %s21_s22 = sshll.u32 %s630_s21, 4  ;;  %s34_s25 = sshll.u32 %s853_s3, 4  ;;  %s22_s22 = int_to_ptr.vmem [resolvable:$true] %s21_s22  ;;  %s35_s25 = int_to_ptr.hbm [resolvable:$true] %s34_s25 }
   0x4   :  { %s631_s26 = smov 384   ;;  %s632_s27 = smov 24  }
   0x5   :  { %27 = dma.hbm_to_vmem [thread:$0]  %s20_s20, 1152, %s22_s22, [#allocation3], %s631_s26, %s631_s26, %s632_s27  }
   0x6   :  { %s633_s28 = smov [#allocation5]   ;;  %s634_s30 = smov 128  }
   0x7   :  { %s36_s29 = sshll.u32 %s633_s28, 4  ;;  %s635_s6 = smov 8   ;;  %s37_s29 = int_to_ptr.vmem [resolvable:$true] %s36_s29 }
   0x8   :  { %42 = dma.hbm_to_vmem [thread:$0]  %s35_s25, 2048, %s37_s29, [#allocation6], %s634_s30, %s634_s30, %s635_s6  }
   0x9   :  { %624 = dma.done.wait [#allocation3], 1152  }
   0xa   :  { %625 = vsyncadd [#allocation3], 4294966144 }
   0xb   :  { %626 = dma.done.wait [#allocation6], 2048  }
   0xc   :  { %627 = vsyncadd [#allocation6], 4294965248  ;;  %vm87_vm0 = vcmask 1043456   ;;  %v63_v0 = vld [vmem:[#allocation2 + $0x30] sm:$0xf]  ;;  %v60_v2 = vld [vmem:[#allocation2 + $0x18] sm:$0xff] }
   0xd   :  { %v64_v1 = vld [vmem:[#allocation2 + $0x38] sm:$0xf]  ;;  %425 = vmatpush.msk.msra.mxu0 %vm87_vm0, %v63_v0  ;;  %v61_v3 = vld [vmem:[#allocation2 + $0x20] sm:$0xff]  ;;  %v58_v5 = vld [vmem:[#allocation2 + $0x8] sm:$0xff]  ;;  %vm74_vm1 = vcmask 162816   ;;  %s636_s15 = smov [#allocation7]  }
   0xe   :  { %430 = vmatpush.msk.msra.mxu1 %vm87_vm0, %v64_v1  ;;  %v57_v4 = vld [vmem:[#allocation2] sm:$0xff]  ;;  %v62_v8 = vld [vmem:[#allocation2 + $0x28] sm:$0xff]  ;;  %v59_v9 = vld [vmem:[#allocation2 + $0x10] sm:$0xff]  ;;  %s409_s16 = sshll.u32 %s636_s15, 4  ;;  %s411_s19 = sshll.u32 %s855_s5, 4  ;;  %s410_s16 = int_to_ptr.vmem [resolvable:$true] %s409_s16  ;;  %s412_s19 = int_to_ptr.hbm [resolvable:$true] %s411_s19 }
   0xf   :  { %v65_v6 = vld [vmem:[#allocation2 + $0x40] sm:$0xf]  ;;  %111 = vmatpush.msra.mxu0 %v60_v2  ;;  %v54_v10 = vld [vmem:[%s850_s0 + $0x8] sm:$0xff]  ;;  %v55_v11 = vld [vmem:[%s850_s0 + $0x10] sm:$0xff] }
  0x10   :  { %140 = vmatpush.msra.mxu1 %v61_v3  ;;  %v53_v7 = vld [vmem:[%s850_s0] sm:$0xff]  ;;  %435 = vmatpush.msk.msra.mxu2 %vm87_vm0, %v65_v6  ;;  %v56_v12 = vld [vmem:[%s850_s0 + $0x18] sm:$0xff]  ;;  %v365_v15 = vld [vmem:[#allocation5 + $0x68] sm:$0xff] }
  0x11   :  { %112 = vmatpush.msra.mxu0 %v57_v4  ;;  %v367_v13 = vld [vmem:[#allocation5 + $0x78] sm:$0xff]  ;;  %v366_v14 = vld [vmem:[#allocation5 + $0x70] sm:$0xff]  ;;  %v364_v16 = vld [vmem:[#allocation5 + $0x60] sm:$0xff] }
  0x12   :  { %141 = vmatpush.msra.mxu1 %v58_v5  ;;  %426 = vmatmul.msk.f32.vlgmr.msra.gmra.mxu0 %vm74_vm1, %v53_v7  ;;  %v363_v17 = vld [vmem:[#allocation5 + $0x58] sm:$0xff]  ;;  %v362_v18 = vld [vmem:[#allocation5 + $0x50] sm:$0xff]  ;;  %v361_v19 = vld [vmem:[#allocation5 + $0x48] sm:$0xff] }
  0x13   :  { %431 = vmatmul.msk.f32.vlgmr.msra.gmra.mxu1 %vm74_vm1, %v53_v7  ;;  %169 = vmatpush.msra.mxu2 %v62_v8  ;;  %v703_v20 = vld [vmem:[%s852_s2] sm:$0x7]  ;;  %v360_v21 = vld [vmem:[#allocation5 + $0x40] sm:$0xff]  ;;  %v358_v25 = vld [vmem:[#allocation5 + $0x30] sm:$0xff] }
  0x14   :  { %372 = vmatpush.msrb.mxu0 %v367_v13  ;;  %448 = vmatpush.msrb.mxu1 %v367_v13  ;;  %v706_v22 = vperm.slane %v703_v20, 0  ;;  %v709_v23 = vperm.slane %v703_v20, 1  ;;  %v359_v24 = vld [vmem:[#allocation5 + $0x38] sm:$0xff]  ;;  %v357_v30 = vld [vmem:[#allocation5 + $0x28] sm:$0xff]  ;;  %v356_v33 = vld [vmem:[#allocation5 + $0x20] sm:$0xff]  ;;  %v718_v48 = vperm.slane %v703_v20, 2 }
  0x15   :  { %170 = vmatpush.msra.mxu2 %v59_v9  ;;  %450 = vmatpush.msra.mxu3 %v367_v13  ;;  %v355_v34 = vld [vmem:[#allocation5 + $0x18] sm:$0xff]  ;;  %v354_v35 = vld [vmem:[#allocation5 + $0x10] sm:$0xff]  ;;  %v353_v40 = vld [vmem:[#allocation5 + $0x8] sm:$0xff] }
  0x16   :  { %436 = vmatmul.msk.f32.vlgmr.msra.gmra.mxu2 %vm74_vm1, %v53_v7  ;;  %373 = vmatpush.msrb.mxu0 %v366_v14  ;;  %v352_v44 = vld [vmem:[#allocation5] sm:$0xff] }
  0x17   :  { %449 = vmatpush.msrb.mxu2 %v367_v13  ;;  %451 = vmatpush.msrb.mxu1 %v366_v14 }
  0x18   :  { %453 = vmatpush.msra.mxu3 %v366_v14  ;;  %374 = vmatpush.msrb.mxu0 %v365_v15 }
  0x19   :  { %452 = vmatpush.msrb.mxu2 %v366_v14  ;;  %454 = vmatpush.msrb.mxu1 %v365_v15 }
  0x1a   :  { %427 = vmatmul.msk.f32.gmra.mxu0 %vm74_vm1, %v54_v10  ;;  %456 = vmatpush.msra.mxu3 %v365_v15 }
  0x1b   :  { %432 = vmatmul.msk.f32.gmra.mxu1 %vm74_vm1, %v54_v10  ;;  %455 = vmatpush.msrb.mxu2 %v365_v15 }
  0x1c   :  { %375 = vmatpush.msrb.mxu0 %v364_v16  ;;  %457 = vmatpush.msrb.mxu1 %v364_v16 }
  0x1d   :  { %458 = vmatpush.msrb.mxu2 %v364_v16  ;;  %459 = vmatpush.msra.mxu3 %v364_v16 }
  0x1e   :  { %437 = vmatmul.msk.f32.gmra.mxu2 %vm74_vm1, %v54_v10  ;;  %376 = vmatpush.msrb.mxu0 %v363_v17 }
  0x1f   :  { %460 = vmatpush.msrb.mxu1 %v363_v17  ;;  %461 = vmatpush.msrb.mxu2 %v363_v17 }
  0x20   :  { %462 = vmatpush.msra.mxu3 %v363_v17  ;;  %377 = vmatpush.msrb.mxu0 %v362_v18 }
  0x21   :  { %463 = vmatpush.msrb.mxu1 %v362_v18  ;;  %464 = vmatpush.msrb.mxu2 %v362_v18 }
  0x22   :  { %428 = vmatmul.msk.f32.gmra.mxu0 %vm74_vm1, %v55_v11  ;;  %465 = vmatpush.msra.mxu3 %v362_v18 }
  0x23   :  { %433 = vmatmul.msk.f32.gmra.mxu1 %vm74_vm1, %v55_v11  ;;  %378 = vmatpush.msrb.mxu0 %v361_v19 }
  0x24   :  { %466 = vmatpush.msrb.mxu1 %v361_v19  ;;  %467 = vmatpush.msrb.mxu2 %v361_v19 }
  0x25   :  { %468 = vmatpush.msra.mxu3 %v361_v19  ;;  %379 = vmatpush.msrb.mxu0 %v360_v21 }
  0x26   :  { %438 = vmatmul.msk.f32.gmra.mxu2 %vm74_vm1, %v55_v11  ;;  %469 = vmatpush.msrb.mxu1 %v360_v21 }
  0x27   :  { %470 = vmatpush.msrb.mxu2 %v360_v21  ;;  %471 = vmatpush.msra.mxu3 %v360_v21 }
  0x28   :  { %380 = vmatpush.msrb.mxu0 %v359_v24  ;;  %472 = vmatpush.msrb.mxu1 %v359_v24 }
  0x29   :  { %473 = vmatpush.msrb.mxu2 %v359_v24  ;;  %474 = vmatpush.msra.mxu3 %v359_v24 }
  0x2a   :  { %429 = vmatmul.msk.f32.gmra.mxu0 %vm74_vm1, %v56_v12  ;;  %475 = vmatpush.msrb.mxu1 %v358_v25 }
  0x2b   :  { %434 = vmatmul.msk.f32.gmra.mxu1 %vm74_vm1, %v56_v12  ;;  %381 = vmatpush.msrb.mxu0 %v358_v25 }
  0x2c   :  { %476 = vmatpush.msrb.mxu2 %v358_v25  ;;  %477 = vmatpush.msra.mxu3 %v358_v25 }
  0x2d   :  { %382 = vmatpush.msrb.mxu0 %v357_v30  ;;  %478 = vmatpush.msrb.mxu1 %v357_v30 }
  0x2e   :  { %439 = vmatmul.msk.f32.gmra.mxu2 %vm74_vm1, %v56_v12  ;;  %480 = vmatpush.msra.mxu3 %v357_v30 }
  0x2f   :  { %479 = vmatpush.msrb.mxu2 %v357_v30  ;;  %383 = vmatpush.msrb.mxu0 %v356_v33 }
  0x30   :  { %481 = vmatpush.msrb.mxu1 %v356_v33  ;;  %483 = vmatpush.msra.mxu3 %v356_v33 }
  0x31   :  { %482 = vmatpush.msrb.mxu2 %v356_v33  ;;  %384 = vmatpush.msrb.mxu0 %v355_v34 }
  0x32   :  { %484 = vmatpush.msrb.mxu1 %v355_v34  ;;  %486 = vmatpush.msra.mxu3 %v355_v34 }
  0x33   :  { %485 = vmatpush.msrb.mxu2 %v355_v34  ;;  %385 = vmatpush.msrb.mxu0 %v354_v35 }
  0x34   :  { %487 = vmatpush.msrb.mxu1 %v354_v35  ;;  %489 = vmatpush.msra.mxu3 %v354_v35 }
  0x35   :  { %488 = vmatpush.msrb.mxu2 %v354_v35  ;;  %386 = vmatpush.msrb.mxu0 %v353_v40 }
  0x36   :  { %490 = vmatpush.msrb.mxu1 %v353_v40  ;;  %492 = vmatpush.msra.mxu3 %v353_v40 }
  0x37   :  { %491 = vmatpush.msrb.mxu2 %v353_v40  ;;  %387 = vmatpush.msrb.mxu0 %v352_v44 }
  0x38   :  { %493 = vmatpush.msrb.mxu1 %v352_v44  ;;  %495 = vmatpush.msra.mxu3 %v352_v44 }
  0x39   :  { %494 = vmatpush.msrb.mxu2 %v352_v44 }
  0x8f   :  { %v114_v26 = vpop.f32.mrf.mxu0 }
  0x90   :  { %v143_v27 = vpop.f32.mrf.mxu1  ;;  %v115_v28 = vadd.f32 %v114_v26, %v706_v22 }
  0x91   :  { %v144_v29 = vadd.f32 %v143_v27, %v709_v23 }
  0x92   :  { %v440_v31 = vmul.f32 -1.442695, %v115_v28 }
  0x93   :  { %v441_v32 = vmul.f32 -1.442695, %v144_v29 }
  0x94   :  { %504 = vpow2.f32 %v440_v31 }
  0x95   :  { %506 = vpow2.f32 %v441_v32 }
  0x97   :  { %v117_v36 = vpop.f32.mrf.mxu0 }
  0x98   :  { %v146_v37 = vpop.f32.mrf.mxu1  ;;  %v118_v38 = vadd.f32 %v117_v36, %v706_v22 }
  0x99   :  { %v147_v39 = vadd.f32 %v146_v37, %v709_v23  ;;  %v172_v41 = vpop.f32.mrf.mxu2 }
  0x9a   :  { %v505_v42 = vpop.eup %504  ;;  %v442_v43 = vmul.f32 -1.442695, %v118_v38  ;;  %v173_v52 = vadd.f32 %v172_v41, %v718_v48 }
  0x9b   :  { %v507_v45 = vpop.eup %506  ;;  %v715_v46 = vadd.f32 1.0, %v505_v42  ;;  %v443_v47 = vmul.f32 -1.442695, %v147_v39 }
  0x9c   :  { %v720_v49 = vadd.f32 1.0, %v507_v45  ;;  %508 = vpow2.f32 %v442_v43 }
  0x9d   :  { %510 = vrcp.f32 %v715_v46  ;;  %v225_v3 = vand.u32 2147483647, %v715_v46  ;;  %v227_v4 = vand.u32 2147483648, %v715_v46  ;;  %vm221_vm3 = vweird.f32 %v715_v46 }
  0x9e   :  { %512 = vrcp.f32 %v720_v49  ;;  %vm236_vm4 = vweird.f32 %v720_v49  ;;  %v240_v13 = vand.u32 2147483647, %v720_v49  ;;  %v242_v18 = vand.u32 2147483648, %v720_v49 }
  0x9f   :  { %514 = vpow2.f32 %v443_v47  ;;  %v120_v50 = vpop.f32.mrf.mxu0  ;;  %v228_v21 = vor.u32 1.1754944e-38, %v227_v4  ;;  %vm226_vm6 = vcmp.eq.f32.partialorder %v225_v3, 8.507059e+37 }
  0xa0   :  { %v149_v51 = vpop.f32.mrf.mxu1  ;;  %v121_v53 = vadd.f32 %v120_v50, %v706_v22  ;;  %516 = vtanh.f32 %v173_v52  ;;  %vm756_vm7 = vcmp.eq.f32.partialorder %v240_v13, 8.507059e+37  ;;  %v243_v41 = vor.u32 1.1754944e-38, %v242_v18 }
  0xa1   :  { %v150_v54 = vadd.f32 %v149_v51, %v709_v23  ;;  %v175_v58 = vpop.f32.mrf.mxu2 }
  0xa2   :  { %v509_v55 = vpop.eup %508  ;;  %v444_v56 = vmul.f32 -1.442695, %v121_v53  ;;  %v176_v7 = vadd.f32 %v175_v58, %v718_v48 }
  0xa3   :  { %v445_v57 = vmul.f32 -1.442695, %v150_v54  ;;  %v511_v59 = vpop.eup %510  ;;  %v727_v60 = vadd.f32 1.0, %v509_v55 }
  0xa4   :  { %v729_v61 = vpop.eup %512  ;;  %v217_v62 = vmul.f32 %v511_v59, %v715_v46  ;;  %518 = vpow2.f32 %v444_v56  ;;  %vm222_vm2 = vweird.f32 %v511_v59 }
  0xa5   :  { %v515_v63 = vpop.eup %514  ;;  %v232_v0 = vmul.f32 %v729_v61, %v720_v49  ;;  %520 = vrcp.f32 %v727_v60  ;;  %vm223_vm5 = vmor %vm221_vm3, %vm222_vm2  ;;  %v255_v29 = vand.u32 2147483647, %v727_v60  ;;  %v257_v34 = vand.u32 2147483648, %v727_v60 }
  0xa6   :  { %v218_v1 = vsub.f32 1.0, %v217_v62  ;;  %v735_v2 = vadd.f32 1.0, %v515_v63  ;;  %522 = vpow2.f32 %v445_v57  ;;  %v517_v12 = vpop.eup %516  ;;  %vm237_vm8 = vweird.f32 %v729_v61 }
  0xa7   :  { %v123_v5 = vpop.f32.mrf.mxu0  ;;  %v233_v8 = vsub.f32 1.0, %v232_v0  ;;  %vm251_vm10 = vweird.f32 %v727_v60  ;;  %vm770_vm11 = vcmp.eq.f32.partialorder %v255_v29, 8.507059e+37  ;;  %v258_v45 = vor.u32 1.1754944e-38, %v257_v34  ;;  %vm776_vm12 = vmor %vm236_vm4, %vm237_vm8 }
  0xa8   :  { %v152_v6 = vpop.f32.mrf.mxu1  ;;  %524 = vrcp.f32 %v735_v2  ;;  %v219_v9 = vmul.f32 %v511_v59, %v218_v1  ;;  %v124_v10 = vadd.f32 %v123_v5, %v706_v22  ;;  %vm266_vm13 = vweird.f32 %v735_v2 }
  0xa9   :  { %v153_v11 = vadd.f32 %v152_v6, %v709_v23  ;;  %526 = vtanh.f32 %v176_v7  ;;  %v234_v22 = vmul.f32 %v729_v61, %v233_v8  ;;  %v178_v26 = vpop.f32.mrf.mxu2  ;;  %v270_v47 = vand.u32 2147483647, %v735_v2 }
  0xaa   :  { %v519_v14 = vpop.eup %518  ;;  %v220_v15 = vadd.f32 %v511_v59, %v219_v9  ;;  %v446_v16 = vmul.f32 -1.442695, %v124_v10  ;;  %v179_v38 = vadd.f32 %v178_v26, %v718_v48  ;;  %v272_v49 = vand.u32 2147483648, %v735_v2 }
  0xab   :  { %v447_v17 = vmul.f32 -1.442695, %v153_v11  ;;  %v521_v19 = vpop.eup %520  ;;  %v747_v20 = vadd.f32 1.0, %v519_v14  ;;  %v235_v36 = vadd.f32 %v729_v61, %v234_v22  ;;  %vm815_vm3 = vcmp.eq.f32.partialorder %v270_v47, 8.507059e+37 }
  0xac   :  { %v523_v23 = vpop.eup %522  ;;  %v247_v24 = vmul.f32 %v521_v19, %v727_v60  ;;  %v224_v25 = vsel %vm223_vm5, %v511_v59, %v220_v15  ;;  %528 = vpow2.f32 %v446_v16  ;;  %vm252_vm9 = vweird.f32 %v521_v19 }
  0xad   :  { %530 = vrcp.f32 %v747_v20  ;;  %v753_v27 = vadd.f32 1.0, %v523_v23  ;;  %v229_v28 = vsel %vm226_vm6, %v228_v21, %v224_v25  ;;  %vm253_vm14 = vmor %vm251_vm10, %vm252_vm9  ;;  %v239_v52 = vsel %vm776_vm12, %v729_v61, %v235_v36 }
  0xae   :  { %v760_v31 = vpop.eup %524  ;;  %v248_v32 = vsub.f32 1.0, %v247_v24  ;;  %v340_v33 = vmul.f32 %v517_v12, %v229_v28  ;;  %532 = vpow2.f32 %v447_v17  ;;  %v285_v57 = vand.u32 2147483647, %v747_v20 }
  0xaf   :  { %v262_v35 = vmul.f32 %v760_v31, %v735_v2  ;;  %534 = vrcp.f32 %v753_v27  ;;  %v527_v39 = vpop.eup %526  ;;  %v287_v61 = vand.u32 2147483648, %v747_v20  ;;  %v244_v3 = vsel %vm756_vm7, %v243_v41, %v239_v52 }
  0xb0   :  { %536 = vtanh.f32 %v340_v33  ;;  %v249_v37 = vmul.f32 %v521_v19, %v248_v32  ;;  %vm267_vm15 = vweird.f32 %v760_v31  ;;  %vm281_vm1 = vweird.f32 %v747_v20 }
  0xb1   :  { %v263_v42 = vsub.f32 1.0, %v262_v35  ;;  %538 = vtanh.f32 %v179_v38  ;;  %v181_v4 = vpop.f32.mrf.mxu2  ;;  %vm811_vm2 = vmor %vm266_vm13, %vm267_vm15  ;;  %vm286_vm5 = vcmp.eq.f32.partialorder %v285_v57, 8.507059e+37  ;;  %v288_v15 = vor.u32 1.1754944e-38, %v287_v61 }
  0xb2   :  { %v529_v43 = vpop.eup %528  ;;  %v250_v44 = vadd.f32 %v521_v19, %v249_v37  ;;  %v182_v9 = vadd.f32 %v181_v4, %v718_v48  ;;  %v273_v18 = vor.u32 1.1754944e-38, %v272_v49  ;;  %vm296_vm6 = vweird.f32 %v753_v27 }
  0xb3   :  { %v531_v50 = vpop.eup %530  ;;  %v782_v51 = vadd.f32 1.0, %v529_v43  ;;  %v264_v53 = vmul.f32 %v760_v31, %v263_v42  ;;  %v302_v22 = vand.u32 2147483648, %v753_v27  ;;  %v300_v34 = vand.u32 2147483647, %v753_v27 }
  0xb4   :  { %v533_v54 = vpop.eup %532  ;;  %v277_v55 = vmul.f32 %v531_v50, %v747_v20  ;;  %v254_v56 = vsel %vm253_vm14, %v521_v19, %v250_v44  ;;  %vm282_vm0 = vweird.f32 %v531_v50 }
  0xb5   :  { %v792_v58 = vpop.eup %534  ;;  %540 = vrcp.f32 %v782_v51  ;;  %v795_v59 = vadd.f32 1.0, %v533_v54  ;;  %v259_v60 = vsel %vm770_vm11, %v258_v45, %v254_v56  ;;  %v265_v6 = vadd.f32 %v760_v31, %v264_v53  ;;  %vm283_vm4 = vmor %vm281_vm1, %vm282_vm0 }
  0xb6   :  { %v537_v62 = vpop.eup %536  ;;  %v278_v63 = vsub.f32 1.0, %v277_v55  ;;  %v292_v0 = vmul.f32 %v792_v58, %v753_v27  ;;  %v341_v1 = vmul.f32 %v527_v39, %v259_v60  ;;  %v315_v21 = vand.u32 2147483647, %v782_v51  ;;  %v503_v55 = vld [vmem:[%s854_s4] ss:$0 sm:$0xff] }
  0xb7   :  { %542 = vrcp.f32 %v795_v59  ;;  %v348_v5 = vmul.f32 %v537_v62, %v244_v3  ;;  %v539_v10 = vpop.eup %538  ;;  %v269_v48 = vsel %vm811_vm2, %v760_v31, %v265_v6  ;;  %v317_v29 = vand.u32 2147483648, %v782_v51 }
  0xb8   :  { %544 = vtanh.f32 %v341_v1  ;;  %v279_v7 = vmul.f32 %v531_v50, %v278_v63  ;;  %v293_v8 = vsub.f32 1.0, %v292_v0  ;;  %v274_v26 = vsel %vm815_vm3, %v273_v18, %v269_v48 }
  0xb9   :  { %388 = vmatmul.f32.vlgmr.msrb.gmra.mxu0 %v348_v5  ;;  %546 = vtanh.f32 %v182_v9  ;;  %vm297_vm7 = vweird.f32 %v792_v58  ;;  %vm311_vm9 = vweird.f32 %v782_v51  ;;  %v318_v37 = vor.u32 1.1754944e-38, %v317_v29 }
  0xba   :  { %v280_v11 = vadd.f32 %v531_v50, %v279_v7  ;;  %v294_v16 = vmul.f32 %v792_v58, %v293_v8  ;;  %vm298_vm10 = vmor %vm296_vm6, %vm297_vm7  ;;  %vm316_vm12 = vcmp.eq.f32.partialorder %v315_v21, 8.507059e+37  ;;  %v303_v41 = vor.u32 1.1754944e-38, %v302_v22 }
  0xbb   :  { %v541_v14 = vpop.eup %540  ;;  %vm301_vm13 = vcmp.eq.f32.partialorder %v300_v34, 8.507059e+37  ;;  %vm326_vm14 = vweird.f32 %v795_v59  ;;  %v332_v27 = vand.u32 2147483648, %v795_v59 }
  0xbc   :  { %v307_v2 = vmul.f32 %v541_v14, %v782_v51  ;;  %v284_v17 = vsel %vm283_vm4, %v531_v50, %v280_v11  ;;  %v295_v31 = vadd.f32 %v792_v58, %v294_v16  ;;  %vm312_vm8 = vweird.f32 %v541_v14 }
  0xbd   :  { %v543_v19 = vpop.eup %542  ;;  %v289_v20 = vsel %vm286_vm5, %v288_v15, %v284_v17  ;;  %vm313_vm11 = vmor %vm311_vm9, %vm312_vm8  ;;  %v330_v50 = vand.u32 2147483647, %v795_v59  ;;  %v333_v52 = vor.u32 1.1754944e-38, %v332_v27 }
  0xbe   :  { %v545_v23 = vpop.eup %544  ;;  %v308_v24 = vsub.f32 1.0, %v307_v2  ;;  %v342_v25 = vmul.f32 %v539_v10, %v289_v20  ;;  %v322_v28 = vmul.f32 %v543_v19, %v795_v59  ;;  %v299_v38 = vsel %vm298_vm10, %v792_v58, %v295_v31 }
  0xbf   :  { %v349_v30 = vmul.f32 %v545_v23, %v274_v26  ;;  %v547_v36 = vpop.eup %546  ;;  %v304_v45 = vsel %vm301_vm13, %v303_v41, %v299_v38  ;;  %vm327_vm15 = vweird.f32 %v543_v19  ;;  %vm331_vm1 = vcmp.eq.f32.partialorder %v330_v50, 8.507059e+37 }
  0xc0   :  { %548 = vtanh.f32 %v342_v25  ;;  %v309_v32 = vmul.f32 %v541_v14, %v308_v24  ;;  %v323_v33 = vsub.f32 1.0, %v322_v28  ;;  %vm328_vm0 = vmor %vm326_vm14, %vm327_vm15 }
  0xc1   :  { %391 = vmatmul.f32.vlgmr.msrb.gmra.mxu1 %v349_v30 }
  0xc2   :  { %v310_v35 = vadd.f32 %v541_v14, %v309_v32  ;;  %v324_v39 = vmul.f32 %v543_v19, %v323_v33 }
  0xc4   :  { %v314_v40 = vsel %vm313_vm11, %v541_v14, %v310_v35  ;;  %v325_v47 = vadd.f32 %v543_v19, %v324_v39 }
  0xc5   :  { %v319_v42 = vsel %vm316_vm12, %v318_v37, %v314_v40 }
  0xc6   :  { %v549_v43 = vpop.eup %548  ;;  %v343_v44 = vmul.f32 %v547_v36, %v319_v42  ;;  %v329_v51 = vsel %vm328_vm0, %v543_v19, %v325_v47 }
  0xc7   :  { %v350_v46 = vmul.f32 %v549_v43, %v304_v45  ;;  %v334_v49 = vsel %vm331_vm1, %v333_v52, %v329_v51 }
  0xc8   :  { %550 = vtanh.f32 %v343_v44 }
  0xc9   :  { %394 = vmatmul.f32.vlgmr.msrb.gmra.mxu2 %v350_v46 }
  0xce   :  { %v551_v53 = vpop.eup %550 }
  0xcf   :  { %v351_v54 = vmul.f32 %v551_v53, %v334_v49 }
  0xd1   :  { %397 = vmatmul.f32.vlgmr.msra.gmra.mxu3 %v351_v54 }
 0x136   :  { %v389_v56 = vpop.f32.mrf.mxu0 }
 0x137   :  { %v390_v57 = vadd.f32 %v503_v55, %v389_v56 }
 0x139   :  { %401 = vst [vmem:[#allocation7] sm:$0xff] %v390_v57 }
 0x13e   :  { %v392_v58 = vpop.f32.mrf.mxu1 }
 0x13f   :  { %v393_v60 = vadd.f32 %v503_v55, %v392_v58 }
 0x141   :  { %402 = vst [vmem:[#allocation7 + $0x8] sm:$0xff] %v393_v60 }
 0x14c   :  { %v395_v61 = vpop.f32.mrf.mxu2 }
 0x14d   :  { %v396_v59 = vadd.f32 %v503_v55, %v395_v61 }
 0x14f   :  { %403 = vst [vmem:[#allocation7 + $0x10] sm:$0xff] %v396_v59 }
 0x154   :  { %v398_v62 = vpop.f32.mrf.mxu3 }
 0x155   :  { %v399_v63 = vadd.f32 %v503_v55, %v398_v62 }
 0x157   :  { %404 = vst [vmem:[#allocation7 + $0x18] sm:$0xff] %v399_v63 }
 0x158   :  { %417 = dma.vmem_to_hbm [thread:$0]  %s410_s16, 512, %s412_s19, [#allocation4], %s634_s30, %s634_s30, %s635_s6  }
 0x159   :  { %628 = dma.done.wait [#allocation4], 512  }
 0x15a   :  { %629 = vsyncadd [#allocation4], 4294966784 }
 0x15b   :  { %422 = vsyncpa [#allocation3], 1 }
 0x15c   :  { %423 = vsyncpa [#allocation6], 1 }
 0x15d   :  { %424 = vsyncpa [#allocation4], 1 }

</bundles_post_ra>
